<compile_context>
chip_gen: v7x
topology: tpu7x:2x2x1
jax: 0.10.0
libtpu: 0.0.40
codegen_flags: <defaults>
</compile_context>

<pallas_src>
import functools

import jax
import jax.numpy as jnp
from jax.experimental import pallas as pl
from jax.experimental.pallas import tpu as pltpu

BN_EPS = 1e-5
PAD = 128          # lane padding for every layer's in/out feature dim
NUM_LAYERS = 5     # fc1..fc4 (+BN+ReLU) and fc5
FEAT_DIM = 16      # fc4 output / feature vector size


def _round_up(x, m):
    return (x + m - 1) // m * m


# --------------------------------------------------------------------------
# Pallas kernel: fused MLP (Linear+BN folded, ReLU) x4  ->  fc5
# --------------------------------------------------------------------------
def imu_mlp_kernel(x_ref, w_ref, b_ref, out_ref):
    h = x_ref[...]  # (bm, 128) f32, input already zero-padded to 128 lanes
    # Four Linear(+folded BN)+ReLU layers on the MXU.  Zero-padded weight
    # rows/cols keep the unused lanes at exactly 0 through every layer.
    for i in range(4):
        h = jnp.dot(h, w_ref[i], preferred_element_type=jnp.float32) + b_ref[i]
        h = jnp.maximum(h, 0.0)
    # Dropout(p=0.5) is identity in eval mode (training is forced False).
    logits = jnp.dot(h, w_ref[4], preferred_element_type=jnp.float32) + b_ref[4]
    # Single lane-dense output slab: features in lanes [0,128), logits in
    # lanes [128,256) -> two unmasked 128-lane stores.
    out_ref[:, 0:PAD] = h
    out_ref[:, PAD:2 * PAD] = logits


# --------------------------------------------------------------------------
# Parameter folding + packing (done once, outside the kernel)
# --------------------------------------------------------------------------
def fold_and_pack_params(raw_params, input_size, num_classes):
    """raw_params: [(W,b,gamma,beta,mean,var)]*4 + [(W5,b5)], PyTorch (out,in).

    Returns (w_slab (5,128,128), b_slab (5,1,128)) with BN folded in and every
    layer zero-padded to 128x128 / 128.
    """
    assert input_size <= PAD, "packed layout assumes IMU feature dim <= 128"
    assert num_classes <= PAD, "packed layout assumes num_classes <= 128"
    dims = [(input_size, 128), (128, 64), (64, 32), (32, 16), (16, num_classes)]

    w_slab = jnp.zeros((NUM_LAYERS, PAD, PAD), jnp.float32)
    b_slab = jnp.zeros((NUM_LAYERS, 1, PAD), jnp.float32)

    for i in range(4):
        W, b, g, be, m, v = raw_params[i]          # W: (out,in)
        scale = g * jax.lax.rsqrt(v + BN_EPS)      # (out,)
        Wf = W.T * scale[None, :]                  # (in,out)
        bf = (b - m) * scale + be                  # (out,)
        din, dout = dims[i]
        w_slab = w_slab.at[i, :din, :dout].set(Wf.astype(jnp.float32))
        b_slab = b_slab.at[i, 0, :dout].set(bf.astype(jnp.float32))

    W5, b5 = raw_params[4]
    din, dout = dims[4]
    w_slab = w_slab.at[4, :din, :dout].set(W5.T.astype(jnp.float32))
    b_slab = b_slab.at[4, 0, :dout].set(b5.astype(jnp.float32))
    return w_slab, b_slab


# --------------------------------------------------------------------------
# Wrapper
# --------------------------------------------------------------------------
@functools.partial(jax.jit, static_argnames=("num_classes",))
def imu_classification_forward(imu_features, w_slab, b_slab, num_classes):
    """Returns (logits (B, num_classes), features (B, 16))."""
    batch, in_dim = imu_features.shape

    bm = min(128, _round_up(batch, 8))         # batch tile (sublane aligned)
    batch_pad = _round_up(batch, bm)

    x = jnp.pad(imu_features.astype(jnp.float32),
                ((0, batch_pad - batch), (0, PAD - in_dim)))

    flops = 2 * batch * (in_dim * 128 + 128 * 64 + 64 * 32 + 32 * 16
                         + 16 * num_classes)
    bytes_accessed = (w_slab.size + b_slab.size + x.size
                      + batch_pad * 2 * PAD) * 4

    out = pl.pallas_call(
        imu_mlp_kernel,
        out_shape=jax.ShapeDtypeStruct((batch_pad, 2 * PAD), jnp.float32),
        grid_spec=pltpu.PrefetchScalarGridSpec(
            num_scalar_prefetch=0,
            grid=(batch_pad // bm,),
            in_specs=[
                pl.BlockSpec((bm, PAD), lambda i: (i, 0)),
                pl.BlockSpec((NUM_LAYERS, PAD, PAD), lambda i: (0, 0, 0)),
                pl.BlockSpec((NUM_LAYERS, 1, PAD), lambda i: (0, 0, 0)),
            ],
            out_specs=pl.BlockSpec((bm, 2 * PAD), lambda i: (i, 0)),
        ),
        compiler_params=pltpu.CompilerParams(
            dimension_semantics=("parallel",)),
        cost_estimate=pl.CostEstimate(
            flops=flops, transcendentals=0, bytes_accessed=bytes_accessed),
    )(x, w_slab, b_slab)

    features = out[:batch, :FEAT_DIM]
    logits = out[:batch, PAD:PAD + num_classes]
    return logits, features


def multimodal_yolo_forward(yolo_input, imu_features, w_slab, b_slab,
                            num_classes):
    """MultimodalYOLOModel.predict(): runs the IMU branch through Pallas.

    TODO(synk): DetectionModel backbone / DetectImu fusion head are external
    pretrained ultralytics modules; the image tensor is passed through as-is.
    """
    classification, features = imu_classification_forward(
        imu_features, w_slab, b_slab, num_classes)
    return classification, features, yolo_input


# --------------------------------------------------------------------------
# Deterministic synthetic parameters (PyTorch shapes: Linear W is (out, in))
# --------------------------------------------------------------------------
def init_imu_params(key, input_size, num_classes=2):
    dims = [input_size, 128, 64, 32, 16]
    params = []
    for i in range(4):
        d_in, d_out = dims[i], dims[i + 1]
        key, kw, kb, kg, kbe, km, kv = jax.random.split(key, 7)
        scale = 1.0 / jnp.sqrt(jnp.float32(d_in))
        W = jax.random.uniform(kw, (d_out, d_in), jnp.float32, -scale, scale)
        b = jax.random.uniform(kb, (d_out,), jnp.float32, -scale, scale)
        gamma = 1.0 + 0.1 * jax.random.normal(kg, (d_out,), jnp.float32)
        beta = 0.1 * jax.random.normal(kbe, (d_out,), jnp.float32)
        mean = 0.1 * jax.random.normal(km, (d_out,), jnp.float32)
        var = 1.0 + 0.1 * jnp.abs(jax.random.normal(kv, (d_out,), jnp.float32))
        params.append((W, b, gamma, beta, mean, var))

    key, kw, kb = jax.random.split(key, 3)
    scale = 1.0 / jnp.sqrt(jnp.float32(16))
    W5 = jax.random.uniform(kw, (num_classes, 16), jnp.float32, -scale, scale)
    b5 = jax.random.uniform(kb, (num_classes,), jnp.float32, -scale, scale)
    params.append((W5, b5))
    return params


if __name__ == "__main__":
    key = jax.random.PRNGKey(0)
    k_img, k_imu, k_par = jax.random.split(key, 3)

    batch = 8
    imu_input_size = 32
    num_classes = 2

    # NCHW image input (carried through; YOLO backbone is external).
    yolo_input = jax.random.normal(k_img, (batch, 4, 16, 16), jnp.float32)
    imu_features = jax.random.normal(k_imu, (batch, imu_input_size), jnp.float32)

    raw_params = init_imu_params(k_par, imu_input_size, num_classes)
    w_slab, b_slab = fold_and_pack_params(raw_params, imu_input_size, num_classes)

    logits, features, _ = multimodal_yolo_forward(
        yolo_input, imu_features, w_slab, b_slab, num_classes)
    logits = jax.block_until_ready(logits)
    features = jax.block_until_ready(features)

    # Pure-JAX reference with the ORIGINAL (unfolded) eval-mode semantics.
    def ref_forward(x, p):
        h = x
        for (W, b, g, be, m, v) in p[:4]:
            h = h @ W.T + b
            h = (h - m) * jax.lax.rsqrt(v + BN_EPS) * g + be
            h = jnp.maximum(h, 0.0)
        W5, b5 = p[4]
        return h @ W5.T + b5, h

    ref_logits, ref_feat = ref_forward(imu_features, raw_params)

    assert logits.shape == (batch, num_classes)
    assert features.shape == (batch, FEAT_DIM)
    assert jnp.allclose(logits, ref_logits, atol=1e-4, rtol=1e-4), (
        jnp.max(jnp.abs(logits - ref_logits)))
    assert jnp.allclose(features, ref_feat, atol=1e-4, rtol=1e-4), (
        jnp.max(jnp.abs(features - ref_feat)))

    print("KERNEL_OK")
</pallas_src>

<mosaic_0001>
module attributes {stable_mosaic.version = 11 : i64} {
  func.func @imu_mlp_kernel(%arg0: i32, %arg1: memref<8x128xf32, #tpu.memory_space<vmem>>, %arg2: memref<5x128x128xf32, #tpu.memory_space<vmem>>, %arg3: memref<5x1x128xf32, #tpu.memory_space<vmem>>, %arg4: memref<8x256xf32, #tpu.memory_space<vmem>>) attributes {dimension_semantics = [#tpu.dimension_semantics<parallel>], iteration_bounds = array<i64: 1>, scalar_prefetch = 0 : i64, scratch_operands = 0 : i64, tpu.core_type = #tpu.core_type<tc>, window_params = [{transform_indices = @transform_0, window_bounds = array<i64: 8, 128>}, {pipeline_mode = #tpu.pipeline_mode<synchronous>, transform_indices = @transform_1, window_bounds = array<i64: 5, 128, 128>}, {pipeline_mode = #tpu.pipeline_mode<synchronous>, transform_indices = @transform_2, window_bounds = array<i64: 5, 1, 128>}, {transform_indices = @transform_3, window_bounds = array<i64: 8, 256>}]} {
    %c0 = arith.constant 0 : index
    %c0_0 = arith.constant 0 : index
    %0 = vector.load %arg1[%c0, %c0_0] : memref<8x128xf32, #tpu.memory_space<vmem>>, vector<8x128xf32>
    %c0_1 = arith.constant 0 : index
    %c0_2 = arith.constant 0 : index
    %c0_3 = arith.constant 0 : index
    %1 = vector.load %arg2[%c0_1, %c0_2, %c0_3] : memref<5x128x128xf32, #tpu.memory_space<vmem>>, vector<1x128x128xf32>
    %2 = vector.shape_cast %1 : vector<1x128x128xf32> to vector<128x128xf32>
    %cst = arith.constant dense<0.000000e+00> : vector<8x128xf32>
    %3 = tpu.matmul %0, %2, %cst {dimension_numbers = #tpu.dot_dimension_numbers<[1], [0], [0], [1], [0, 0, 1, 1], [], []>} : vector<8x128xf32>, vector<128x128xf32>, vector<8x128xf32> -> vector<8x128xf32>
    %c0_4 = arith.constant 0 : index
    %c0_5 = arith.constant 0 : index
    %c0_6 = arith.constant 0 : index
    %4 = vector.load %arg3[%c0_4, %c0_5, %c0_6] : memref<5x1x128xf32, #tpu.memory_space<vmem>>, vector<1x1x128xf32>
    %5 = vector.shape_cast %4 : vector<1x1x128xf32> to vector<1x128xf32>
    %6 = vector.broadcast %5 : vector<1x128xf32> to vector<8x128xf32>
    %7 = arith.addf %3, %6 : vector<8x128xf32>
    %cst_7 = arith.constant 0.000000e+00 : f32
    %8 = vector.broadcast %cst_7 : f32 to vector<8x128xf32>
    %9 = arith.maximumf %7, %8 : vector<8x128xf32>
    %c1 = arith.constant 1 : index
    %c0_8 = arith.constant 0 : index
    %c0_9 = arith.constant 0 : index
    %10 = vector.load %arg2[%c1, %c0_8, %c0_9] : memref<5x128x128xf32, #tpu.memory_space<vmem>>, vector<1x128x128xf32>
    %11 = vector.shape_cast %10 : vector<1x128x128xf32> to vector<128x128xf32>
    %cst_10 = arith.constant dense<0.000000e+00> : vector<8x128xf32>
    %12 = tpu.matmul %9, %11, %cst_10 {dimension_numbers = #tpu.dot_dimension_numbers<[1], [0], [0], [1], [0, 0, 1, 1], [], []>} : vector<8x128xf32>, vector<128x128xf32>, vector<8x128xf32> -> vector<8x128xf32>
    %c1_11 = arith.constant 1 : index
    %c0_12 = arith.constant 0 : index
    %c0_13 = arith.constant 0 : index
    %13 = vector.load %arg3[%c1_11, %c0_12, %c0_13] : memref<5x1x128xf32, #tpu.memory_space<vmem>>, vector<1x1x128xf32>
    %14 = vector.shape_cast %13 : vector<1x1x128xf32> to vector<1x128xf32>
    %15 = vector.broadcast %14 : vector<1x128xf32> to vector<8x128xf32>
    %16 = arith.addf %12, %15 : vector<8x128xf32>
    %cst_14 = arith.constant 0.000000e+00 : f32
    %17 = vector.broadcast %cst_14 : f32 to vector<8x128xf32>
    %18 = arith.maximumf %16, %17 : vector<8x128xf32>
    %c2 = arith.constant 2 : index
    %c0_15 = arith.constant 0 : index
    %c0_16 = arith.constant 0 : index
    %19 = vector.load %arg2[%c2, %c0_15, %c0_16] : memref<5x128x128xf32, #tpu.memory_space<vmem>>, vector<1x128x128xf32>
    %20 = vector.shape_cast %19 : vector<1x128x128xf32> to vector<128x128xf32>
    %cst_17 = arith.constant dense<0.000000e+00> : vector<8x128xf32>
    %21 = tpu.matmul %18, %20, %cst_17 {dimension_numbers = #tpu.dot_dimension_numbers<[1], [0], [0], [1], [0, 0, 1, 1], [], []>} : vector<8x128xf32>, vector<128x128xf32>, vector<8x128xf32> -> vector<8x128xf32>
    %c2_18 = arith.constant 2 : index
    %c0_19 = arith.constant 0 : index
    %c0_20 = arith.constant 0 : index
    %22 = vector.load %arg3[%c2_18, %c0_19, %c0_20] : memref<5x1x128xf32, #tpu.memory_space<vmem>>, vector<1x1x128xf32>
    %23 = vector.shape_cast %22 : vector<1x1x128xf32> to vector<1x128xf32>
    %24 = vector.broadcast %23 : vector<1x128xf32> to vector<8x128xf32>
    %25 = arith.addf %21, %24 : vector<8x128xf32>
    %cst_21 = arith.constant 0.000000e+00 : f32
    %26 = vector.broadcast %cst_21 : f32 to vector<8x128xf32>
    %27 = arith.maximumf %25, %26 : vector<8x128xf32>
    %c3 = arith.constant 3 : index
    %c0_22 = arith.constant 0 : index
    %c0_23 = arith.constant 0 : index
    %28 = vector.load %arg2[%c3, %c0_22, %c0_23] : memref<5x128x128xf32, #tpu.memory_space<vmem>>, vector<1x128x128xf32>
    %29 = vector.shape_cast %28 : vector<1x128x128xf32> to vector<128x128xf32>
    %cst_24 = arith.constant dense<0.000000e+00> : vector<8x128xf32>
    %30 = tpu.matmul %27, %29, %cst_24 {dimension_numbers = #tpu.dot_dimension_numbers<[1], [0], [0], [1], [0, 0, 1, 1], [], []>} : vector<8x128xf32>, vector<128x128xf32>, vector<8x128xf32> -> vector<8x128xf32>
    %c3_25 = arith.constant 3 : index
    %c0_26 = arith.constant 0 : index
    %c0_27 = arith.constant 0 : index
    %31 = vector.load %arg3[%c3_25, %c0_26, %c0_27] : memref<5x1x128xf32, #tpu.memory_space<vmem>>, vector<1x1x128xf32>
    %32 = vector.shape_cast %31 : vector<1x1x128xf32> to vector<1x128xf32>
    %33 = vector.broadcast %32 : vector<1x128xf32> to vector<8x128xf32>
    %34 = arith.addf %30, %33 : vector<8x128xf32>
    %cst_28 = arith.constant 0.000000e+00 : f32
    %35 = vector.broadcast %cst_28 : f32 to vector<8x128xf32>
    %36 = arith.maximumf %34, %35 : vector<8x128xf32>
    %c4 = arith.constant 4 : index
    %c0_29 = arith.constant 0 : index
    %c0_30 = arith.constant 0 : index
    %37 = vector.load %arg2[%c4, %c0_29, %c0_30] : memref<5x128x128xf32, #tpu.memory_space<vmem>>, vector<1x128x128xf32>
    %38 = vector.shape_cast %37 : vector<1x128x128xf32> to vector<128x128xf32>
    %cst_31 = arith.constant dense<0.000000e+00> : vector<8x128xf32>
    %39 = tpu.matmul %36, %38, %cst_31 {dimension_numbers = #tpu.dot_dimension_numbers<[1], [0], [0], [1], [0, 0, 1, 1], [], []>} : vector<8x128xf32>, vector<128x128xf32>, vector<8x128xf32> -> vector<8x128xf32>
    %c4_32 = arith.constant 4 : index
    %c0_33 = arith.constant 0 : index
    %c0_34 = arith.constant 0 : index
    %40 = vector.load %arg3[%c4_32, %c0_33, %c0_34] : memref<5x1x128xf32, #tpu.memory_space<vmem>>, vector<1x1x128xf32>
    %41 = vector.shape_cast %40 : vector<1x1x128xf32> to vector<1x128xf32>
    %42 = vector.broadcast %41 : vector<1x128xf32> to vector<8x128xf32>
    %43 = arith.addf %39, %42 : vector<8x128xf32>
    %c0_35 = arith.constant 0 : index
    %c0_36 = arith.constant 0 : index
    %44 = vector.load %arg4[%c0_35, %c0_36] : memref<8x256xf32, #tpu.memory_space<vmem>>, vector<8x128xf32>
    tpu.vector_store %arg4[%c0_35, %c0_36], %36 {strides = array<i32>} : memref<8x256xf32, #tpu.memory_space<vmem>>, vector<8x128xf32>,
    %c0_37 = arith.constant 0 : index
    %c128 = arith.constant 128 : index
    %45 = vector.load %arg4[%c0_37, %c128] : memref<8x256xf32, #tpu.memory_space<vmem>>, vector<8x128xf32>
    tpu.vector_store %arg4[%c0_37, %c128], %43 {strides = array<i32>} : memref<8x256xf32, #tpu.memory_space<vmem>>, vector<8x128xf32>,
    return
  }
  func.func @transform_0(%arg0: i32) -> (i32, i32) {
    %c0_i32 = arith.constant 0 : i32
    %c0_i32_0 = arith.constant 0 : i32
    return %arg0, %c0_i32 : i32, i32
  }
  func.func @transform_1(%arg0: i32) -> (i32, i32, i32) {
    %c0_i32 = arith.constant 0 : i32
    %c0_i32_0 = arith.constant 0 : i32
    %c0_i32_1 = arith.constant 0 : i32
    %c0_i32_2 = arith.constant 0 : i32
    return %c0_i32, %c0_i32_0, %c0_i32_1 : i32, i32, i32
  }
  func.func @transform_2(%arg0: i32) -> (i32, i32, i32) {
    %c0_i32 = arith.constant 0 : i32
    %c0_i32_0 = arith.constant 0 : i32
    %c0_i32_1 = arith.constant 0 : i32
    %c0_i32_2 = arith.constant 0 : i32
    return %c0_i32, %c0_i32_0, %c0_i32_1 : i32, i32, i32
  }
  func.func @transform_3(%arg0: i32) -> (i32, i32) {
    %c0_i32 = arith.constant 0 : i32
    %c0_i32_0 = arith.constant 0 : i32
    return %arg0, %c0_i32 : i32, i32
  }
}

</mosaic_0001>

<bundles_post_ra>
// kernel: imu_classification_forward.1
= control target key start
LH: loop header
LB: loop body
LE: loop exit
PB: predicated region body
PF: predicated region fallthrough
CT: control target
= control target key end

     0   :  { %8 = vsyncpa [#allocation3], 0  ;;  %s932_s12 = smov [#allocation2]   ;;  %s1044_s0 = inlined_call_operand.vmem [shape: f32[8,128], index: 0, kind: input, shape index: {}]   ;;  %s1045_s1 = inlined_call_operand.hbm [shape: f32[5,128,128], index: 1, kind: input, shape index: {}]   ;;  %s1046_s2 = inlined_call_operand.vmem [shape: f32[5,1,128], index: 2, kind: input, shape index: {}]   ;;  %s1047_s3 = inlined_call_operand.vmem [shape: f32[8,256], index: 3, kind: output, shape index: {}]  }
   0x1   :  { %s16_s13 = sshll.u32 %s932_s12, 4  ;;  %s908_s16 = scalar_lea.hbm %s1045_s1, 10240  ;;  %s17_s13 = int_to_ptr.vmem [resolvable:$true] %s16_s13 }
   0x2   :  { %p909_p0 = scmp.ne.s32.totalorder %s1045_s1, %s908_s16  ;;  %p912_p1 = scmp.lt.u32.totalorder %s908_s16, %s1045_s1 }
   0x4   :  { %p914_p2 = pnand %p912_p1, %p909_p0 }
   0x6   :  { %917 = shalt.err (!%p914_p2)
}
   0x7   :  { %s918_s21 = scalar_lea.vmem %s17_s13, 10240  ;;  %p923_p4 = scmp.lt.s32.totalorder %s17_s13, %s17_s13 }
   0x8   :  { %p919_p3 = scmp.ne.s32.totalorder %s17_s13, %s918_s21  ;;  %p924_p5 = scmp.lt.s32.totalorder %s918_s21, %s918_s21 }
   0xa   :  { %p925_p6 = por %p924_p5, %p923_p4 }
   0xc   :  { %p926_p7 = pnand %p925_p6, %p919_p3 }
   0xe   :  { %929 = shalt.err (!%p926_p7)
}
   0xf   :  { %s933_s22 = smov 128   ;;  %s934_s23 = smov 8  }
  0x10   :  { %22 = dma.hbm_to_vmem [thread:$0]  %s1045_s1, 10240, %s17_s13, [#allocation3], %s933_s22, %s933_s22, %s934_s23  }
  0x11   :  { %930 = dma.done.wait [#allocation3], 10240  }
  0x12   :  { %931 = vsyncadd [#allocation3], 4294957056  ;;  %v935_v0 = vmov 0.0|0.0   ;;  %vm936_vm0 = vmmov 0   ;;  %v937_v1 = vmov 0.0   ;;  %v29_v2 = vld [vmem:[#allocation2] sm:$0xff] }
  0x13   :  { %782 = vmatprep.subr.bf16.mxu0 %v935_v0  ;;  %639 = vmatprep.mubr.msk.f32.mxu0 %vm936_vm0, %v937_v1  ;;  %v30_v3 = vld [vmem:[#allocation2 + $0x8] sm:$0xff]  ;;  %v31_v4 = vld [vmem:[#allocation2 + $0x10] sm:$0xff]  ;;  %v32_v6 = vld [vmem:[#allocation2 + $0x18] sm:$0xff] }
  0x14   :  { %806 = vmatprep.subr.bf16.mxu1 %v935_v0  ;;  %674 = vmatprep.mubr.msk.f32.mxu1 %vm936_vm0, %v937_v1  ;;  %v783_v5 = vpack.c.bf16 %v30_v3, %v29_v2  ;;  %v786_v7 = vpack.c.bf16 %v32_v6, %v31_v4  ;;  %v33_v8 = vld [vmem:[#allocation2 + $0x20] sm:$0xff]  ;;  %v34_v9 = vld [vmem:[#allocation2 + $0x28] sm:$0xff]  ;;  %v126_v12 = vld [vmem:[#allocation2 + $0x90] sm:$0xff] }
  0x15   :  { %v124_v10 = vld [vmem:[#allocation2 + $0x80] sm:$0xff]  ;;  %v125_v11 = vld [vmem:[#allocation2 + $0x88] sm:$0xff]  ;;  %v127_v13 = vld [vmem:[#allocation2 + $0x98] sm:$0xff]  ;;  %v789_v14 = vpack.c.bf16 %v34_v9, %v33_v8 }
  0x16   :  { %784 = vmatpush3.bf16.msra.mxu0 %v783_v5  ;;  %v807_v15 = vpack.c.bf16 %v125_v11, %v124_v10  ;;  %v35_v16 = vld [vmem:[#allocation2 + $0x30] sm:$0xff]  ;;  %v36_v17 = vld [vmem:[#allocation2 + $0x38] sm:$0xff]  ;;  %v810_v18 = vpack.c.bf16 %v127_v13, %v126_v12  ;;  %v128_v19 = vld [vmem:[#allocation2 + $0xa0] sm:$0xff] }
  0x17   :  { %785 = vmatprep.subr.bf16.mxu0 %v935_v0  ;;  %v129_v20 = vld [vmem:[#allocation2 + $0xa8] sm:$0xff]  ;;  %v792_v21 = vpack.c.bf16 %v36_v17, %v35_v16  ;;  %v37_v22 = vld [vmem:[#allocation2 + $0x40] sm:$0xff]  ;;  %v130_v25 = vld [vmem:[#allocation2 + $0xb0] sm:$0xff] }
  0x18   :  { %808 = vmatpush3.bf16.msra.mxu1 %v807_v15  ;;  %v38_v23 = vld [vmem:[#allocation2 + $0x48] sm:$0xff]  ;;  %v813_v24 = vpack.c.bf16 %v129_v20, %v128_v19  ;;  %v131_v26 = vld [vmem:[#allocation2 + $0xb8] sm:$0xff]  ;;  %v39_v28 = vld [vmem:[#allocation2 + $0x50] sm:$0xff] }
  0x19   :  { %809 = vmatprep.subr.bf16.mxu1 %v935_v0  ;;  %v795_v27 = vpack.c.bf16 %v38_v23, %v37_v22  ;;  %v40_v29 = vld [vmem:[#allocation2 + $0x58] sm:$0xff]  ;;  %v816_v30 = vpack.c.bf16 %v131_v26, %v130_v25  ;;  %v132_v31 = vld [vmem:[#allocation2 + $0xc0] sm:$0xff]  ;;  %v133_v32 = vld [vmem:[#allocation2 + $0xc8] sm:$0xff] }
  0x1a   :  { %787 = vmatpush3.bf16.msra.mxu0 %v786_v7  ;;  %v798_v33 = vpack.c.bf16 %v40_v29, %v39_v28  ;;  %v41_v34 = vld [vmem:[#allocation2 + $0x60] sm:$0xff]  ;;  %v42_v35 = vld [vmem:[#allocation2 + $0x68] sm:$0xff]  ;;  %v819_v36 = vpack.c.bf16 %v133_v32, %v132_v31  ;;  %v134_v37 = vld [vmem:[#allocation2 + $0xd0] sm:$0xff] }
  0x1b   :  { %788 = vmatprep.subr.bf16.mxu0 %v935_v0  ;;  %v135_v38 = vld [vmem:[#allocation2 + $0xd8] sm:$0xff]  ;;  %v801_v39 = vpack.c.bf16 %v42_v35, %v41_v34  ;;  %v43_v40 = vld [vmem:[#allocation2 + $0x70] sm:$0xff]  ;;  %v136_v43 = vld [vmem:[#allocation2 + $0xe0] sm:$0xff] }
  0x1c   :  { %811 = vmatpush3.bf16.msra.mxu1 %v810_v18  ;;  %v44_v41 = vld [vmem:[#allocation2 + $0x78] sm:$0xff]  ;;  %v822_v42 = vpack.c.bf16 %v135_v38, %v134_v37  ;;  %v137_v44 = vld [vmem:[#allocation2 + $0xe8] sm:$0xff]  ;;  %v28_v47 = vld [vmem:[%s1044_s0] sm:$0xff] }
  0x1d   :  { %812 = vmatprep.subr.bf16.mxu1 %v935_v0  ;;  %v804_v45 = vpack.c.bf16 %v44_v41, %v43_v40  ;;  %v825_v46 = vpack.c.bf16 %v137_v44, %v136_v43  ;;  %v138_v48 = vld [vmem:[#allocation2 + $0xf0] sm:$0xff]  ;;  %v139_v49 = vld [vmem:[#allocation2 + $0xf8] sm:$0xff]  ;;  %v220_v51 = vld [vmem:[#allocation2 + $0x100] sm:$0xff] }
  0x1e   :  { %790 = vmatpush3.bf16.msra.mxu0 %v789_v14  ;;  %v828_v50 = vpack.c.bf16 %v139_v49, %v138_v48  ;;  %v221_v52 = vld [vmem:[#allocation2 + $0x108] sm:$0xff]  ;;  %v222_v53 = vld [vmem:[#allocation2 + $0x110] sm:$0xff]  ;;  %v223_v55 = vld [vmem:[#allocation2 + $0x118] sm:$0xff] }
  0x1f   :  { %791 = vmatprep.subr.bf16.mxu0 %v935_v0  ;;  %v831_v54 = vpack.c.bf16 %v221_v52, %v220_v51  ;;  %v834_v56 = vpack.c.bf16 %v223_v55, %v222_v53  ;;  %v224_v57 = vld [vmem:[#allocation2 + $0x120] sm:$0xff]  ;;  %v225_v58 = vld [vmem:[#allocation2 + $0x128] sm:$0xff]  ;;  %v226_v60 = vld [vmem:[#allocation2 + $0x130] sm:$0xff] }
  0x20   :  { %814 = vmatpush3.bf16.msra.mxu1 %v813_v24  ;;  %v837_v59 = vpack.c.bf16 %v225_v58, %v224_v57  ;;  %v227_v61 = vld [vmem:[#allocation2 + $0x138] sm:$0xff]  ;;  %v228_v63 = vld [vmem:[#allocation2 + $0x140] sm:$0xff]  ;;  %v229_v2 = vld [vmem:[#allocation2 + $0x148] sm:$0xff] }
  0x21   :  { %815 = vmatprep.subr.bf16.mxu1 %v935_v0  ;;  %v840_v62 = vpack.c.bf16 %v227_v61, %v226_v60  ;;  %v843_v3 = vpack.c.bf16 %v229_v2, %v228_v63  ;;  %v230_v4 = vld [vmem:[#allocation2 + $0x150] sm:$0xff]  ;;  %v231_v5 = vld [vmem:[#allocation2 + $0x158] sm:$0xff]  ;;  %v232_v7 = vld [vmem:[#allocation2 + $0x160] sm:$0xff] }
  0x22   :  { %793 = vmatpush3.bf16.msra.mxu0 %v792_v21  ;;  %v846_v6 = vpack.c.bf16 %v231_v5, %v230_v4  ;;  %v233_v8 = vld [vmem:[#allocation2 + $0x168] sm:$0xff]  ;;  %v513_v10 = vld [vmem:[%s1046_s2] ss:$0 sm:$0xff]  ;;  %v234_v15 = vld [vmem:[#allocation2 + $0x170] sm:$0xff] }
  0x23   :  { %794 = vmatprep.subr.bf16.mxu0 %v935_v0  ;;  %v849_v9 = vpack.c.bf16 %v233_v8, %v232_v7  ;;  %v235_v16 = vld [vmem:[#allocation2 + $0x178] sm:$0xff]  ;;  %v316_v18 = vld [vmem:[#allocation2 + $0x180] sm:$0xff]  ;;  %v317_v19 = vld [vmem:[#allocation2 + $0x188] sm:$0xff] }
  0x24   :  { %817 = vmatpush3.bf16.msra.mxu1 %v816_v30  ;;  %v852_v17 = vpack.c.bf16 %v235_v16, %v234_v15  ;;  %v318_v20 = vld [vmem:[#allocation2 + $0x190] sm:$0xff]  ;;  %v855_v21 = vpack.c.bf16 %v317_v19, %v316_v18  ;;  %v319_v22 = vld [vmem:[#allocation2 + $0x198] sm:$0xff]  ;;  %v320_v24 = vld [vmem:[#allocation2 + $0x1a0] sm:$0xff] }
  0x25   :  { %818 = vmatprep.subr.bf16.mxu1 %v935_v0  ;;  %v858_v23 = vpack.c.bf16 %v319_v22, %v318_v20  ;;  %v321_v25 = vld [vmem:[#allocation2 + $0x1a8] sm:$0xff]  ;;  %v323_v28 = vld [vmem:[#allocation2 + $0x1b8] sm:$0xff]  ;;  %v324_v30 = vld [vmem:[#allocation2 + $0x1c0] sm:$0xff] }
  0x26   :  { %796 = vmatpush3.bf16.msra.mxu0 %v795_v27  ;;  %v861_v26 = vpack.c.bf16 %v321_v25, %v320_v24  ;;  %v322_v27 = vld [vmem:[#allocation2 + $0x1b0] sm:$0xff]  ;;  %v325_v31 = vld [vmem:[#allocation2 + $0x1c8] sm:$0xff]  ;;  %v327_v34 = vld [vmem:[#allocation2 + $0x1d8] sm:$0xff] }
  0x27   :  { %797 = vmatprep.subr.bf16.mxu0 %v935_v0  ;;  %v864_v29 = vpack.c.bf16 %v323_v28, %v322_v27  ;;  %v867_v32 = vpack.c.bf16 %v325_v31, %v324_v30  ;;  %v329_v37 = vld [vmem:[#allocation2 + $0x1e8] sm:$0xff]  ;;  %v330_v44 = vld [vmem:[#allocation2 + $0x1f0] sm:$0xff]  ;;  %v415_v51 = vld [vmem:[#allocation2 + $0x218] sm:$0xff] }
  0x28   :  { %820 = vmatpush3.bf16.msra.mxu1 %v819_v36  ;;  %v328_v36 = vld [vmem:[#allocation2 + $0x1e0] sm:$0xff]  ;;  %v413_v48 = vld [vmem:[#allocation2 + $0x208] sm:$0xff]  ;;  %v414_v49 = vld [vmem:[#allocation2 + $0x210] sm:$0xff] }
  0x29   :  { %821 = vmatprep.subr.bf16.mxu1 %v935_v0  ;;  %v873_v38 = vpack.c.bf16 %v329_v37, %v328_v36  ;;  %v882_v52 = vpack.c.bf16 %v415_v51, %v414_v49  ;;  %v416_v53 = vld [vmem:[#allocation2 + $0x220] sm:$0xff]  ;;  %v422_v61 = vld [vmem:[#allocation2 + $0x250] sm:$0xff] }
  0x2a   :  { %799 = vmatpush3.bf16.msra.mxu0 %v798_v33  ;;  %v326_v33 = vld [vmem:[#allocation2 + $0x1d0] sm:$0xff]  ;;  %v420_v58 = vld [vmem:[#allocation2 + $0x240] sm:$0xff] }
  0x2b   :  { %800 = vmatprep.subr.bf16.mxu0 %v935_v0  ;;  %v870_v35 = vpack.c.bf16 %v327_v34, %v326_v33  ;;  %v424_v2 = vld [vmem:[#allocation2 + $0x260] sm:$0xff] }
  0x2c   :  { %823 = vmatpush3.bf16.msra.mxu1 %v822_v42  ;;  %v517_v5 = vld [vmem:[%s1046_s2 + $0x2] ss:$0 sm:$0xff] }
  0x2d   :  { %824 = vmatprep.subr.bf16.mxu1 %v935_v0 }
  0x2e   :  { %802 = vmatpush3.bf16.msra.mxu0 %v801_v39  ;;  %v515_v39 = vld [vmem:[%s1046_s2 + $0x1] ss:$0 sm:$0xff] }
  0x2f   :  { %803 = vmatprep.subr.bf16.mxu0 %v935_v0 }
  0x30   :  { %826 = vmatpush3.bf16.msra.mxu1 %v825_v46 }
  0x31   :  { %827 = vmatprep.subr.bf16.mxu1 %v935_v0 }
  0x32   :  { %805 = vmatpush3.bf16.msra.mxu0 %v804_v45  ;;  %v331_v45 = vld [vmem:[#allocation2 + $0x1f8] sm:$0xff] }
  0x33   :  { %830 = vmatprep.subr.bf16.mxu0 %v935_v0  ;;  %v876_v46 = vpack.c.bf16 %v331_v45, %v330_v44 }
  0x34   :  { %829 = vmatpush3.bf16.msra.mxu1 %v828_v50 }
  0x35   :  { %640 = vmatmul.mubr.f32.vlgmr.msra.gmra.mrb[0].mxu0 %v28_v47  ;;  %854 = vmatprep.subr.bf16.mxu1 %v935_v0  ;;  %v412_v47 = vld [vmem:[#allocation2 + $0x200] sm:$0xff] }
  0x36   :  { %709 = vmatprep.mubr.msk.f32.mxu0 %vm936_vm0, %v937_v1  ;;  %832 = vmatpush3.bf16.msra.mxu0 %v831_v54  ;;  %v879_v50 = vpack.c.bf16 %v413_v48, %v412_v47  ;;  %v417_v54 = vld [vmem:[#allocation2 + $0x228] sm:$0xff] }
  0x37   :  { %833 = vmatprep.subr.bf16.mxu0 %v935_v0  ;;  %v885_v55 = vpack.c.bf16 %v417_v54, %v416_v53 }
  0x3a   :  { %835 = vmatpush3.bf16.msra.mxu0 %v834_v56  ;;  %v419_v56 = vld [vmem:[#allocation2 + $0x238] sm:$0xff] }
  0x3b   :  { %836 = vmatprep.subr.bf16.mxu0 %v935_v0 }
  0x3e   :  { %838 = vmatpush3.bf16.msra.mxu0 %v837_v59  ;;  %v421_v59 = vld [vmem:[#allocation2 + $0x248] sm:$0xff] }
  0x3f   :  { %839 = vmatprep.subr.bf16.mxu0 %v935_v0  ;;  %v891_v60 = vpack.c.bf16 %v421_v59, %v420_v58 }
  0x42   :  { %841 = vmatpush3.bf16.msra.mxu0 %v840_v62  ;;  %v423_v62 = vld [vmem:[#allocation2 + $0x258] sm:$0xff] }
  0x43   :  { %842 = vmatprep.subr.bf16.mxu0 %v935_v0  ;;  %v894_v63 = vpack.c.bf16 %v423_v62, %v422_v61 }
  0x46   :  { %844 = vmatpush3.bf16.msra.mxu0 %v843_v3  ;;  %v425_v3 = vld [vmem:[#allocation2 + $0x268] sm:$0xff] }
  0x47   :  { %845 = vmatprep.subr.bf16.mxu0 %v935_v0  ;;  %v897_v4 = vpack.c.bf16 %v425_v3, %v424_v2 }
  0x4a   :  { %847 = vmatpush3.bf16.msra.mxu0 %v846_v6 }
  0x4b   :  { %848 = vmatprep.subr.bf16.mxu0 %v935_v0 }
  0x4e   :  { %850 = vmatpush3.bf16.msra.mxu0 %v849_v9 }
  0x4f   :  { %851 = vmatprep.subr.bf16.mxu0 %v935_v0 }
  0x52   :  { %853 = vmatpush3.bf16.msra.mxu0 %v852_v17  ;;  %v521_v17 = vld [vmem:[%s1046_s2 + $0x4] ss:$0 sm:$0xff] }
  0x53   :  { %878 = vmatprep.subr.bf16.mxu0 %v935_v0 }
 0x108   :  { %v118_v11 = vpop.f32.mrb[0].mxu0 }
 0x109   :  { %v119_v12 = vadd.f32 %v513_v10, %v118_v11  ;;  %v641_v13 = vpop.f32.mrb[1].mxu0  ;;  %v426_v10 = vld [vmem:[#allocation2 + $0x270] sm:$0xff]  ;;  %v427_v11 = vld [vmem:[#allocation2 + $0x278] sm:$0xff] }
 0x10a   :  { %v519_v13 = vld [vmem:[%s1046_s2 + $0x3] ss:$0 sm:$0xff] }
 0x10b   :  { %v122_v14 = vmax.f32 %v119_v12, 0.0  ;;  %v900_v12 = vpack.c.bf16 %v427_v11, %v426_v10 }
 0x10d   :  { %675 = vmatmul.mubr.f32.vlgmr.msra.gmra.mrb[0].mxu1 %v122_v14 }
 0x10e   :  { %744 = vmatprep.mubr.msk.f32.mxu1 %vm936_vm0, %v937_v1  ;;  %856 = vmatpush3.bf16.msra.mxu1 %v855_v21 }
 0x10f   :  { %857 = vmatprep.subr.bf16.mxu1 %v935_v0 }
 0x112   :  { %859 = vmatpush3.bf16.msra.mxu1 %v858_v23 }
 0x113   :  { %860 = vmatprep.subr.bf16.mxu1 %v935_v0 }
 0x116   :  { %862 = vmatpush3.bf16.msra.mxu1 %v861_v26 }
 0x117   :  { %863 = vmatprep.subr.bf16.mxu1 %v935_v0 }
 0x11a   :  { %865 = vmatpush3.bf16.msra.mxu1 %v864_v29 }
 0x11b   :  { %866 = vmatprep.subr.bf16.mxu1 %v935_v0 }
 0x11e   :  { %868 = vmatpush3.bf16.msra.mxu1 %v867_v32 }
 0x11f   :  { %869 = vmatprep.subr.bf16.mxu1 %v935_v0 }
 0x122   :  { %871 = vmatpush3.bf16.msra.mxu1 %v870_v35 }
 0x123   :  { %872 = vmatprep.subr.bf16.mxu1 %v935_v0 }
 0x126   :  { %874 = vmatpush3.bf16.msra.mxu1 %v873_v38 }
 0x127   :  { %875 = vmatprep.subr.bf16.mxu1 %v935_v0 }
 0x12a   :  { %877 = vmatpush3.bf16.msra.mxu1 %v876_v46 }
 0x1e0   :  { %v214_v40 = vpop.f32.mrb[0].mxu1 }
 0x1e1   :  { %v215_v41 = vadd.f32 %v515_v39, %v214_v40  ;;  %v676_v42 = vpop.f32.mrb[1].mxu1 }
 0x1e3   :  { %v218_v43 = vmax.f32 %v215_v41, 0.0 }
 0x1e5   :  { %710 = vmatmul.mubr.f32.vlgmr.msra.gmra.mrb[2].mxu0 %v218_v43 }
 0x1e6   :  { %779 = vmatprep.mubr.msk.f32.mxu0 %vm936_vm0, %v937_v1  ;;  %880 = vmatpush3.bf16.msra.mxu0 %v879_v50  ;;  %v418_v1 = vld [vmem:[#allocation2 + $0x230] sm:$0xff] }
 0x1e7   :  { %881 = vmatprep.subr.bf16.mxu0 %v935_v0  ;;  %v888_v57 = vpack.c.bf16 %v419_v56, %v418_v1 }
 0x1ea   :  { %883 = vmatpush3.bf16.msra.mxu0 %v882_v52 }
 0x1eb   :  { %884 = vmatprep.subr.bf16.mxu0 %v935_v0 }
 0x1ee   :  { %886 = vmatpush3.bf16.msra.mxu0 %v885_v55 }
 0x1ef   :  { %887 = vmatprep.subr.bf16.mxu0 %v935_v0 }
 0x1f2   :  { %889 = vmatpush3.bf16.msra.mxu0 %v888_v57 }
 0x1f3   :  { %890 = vmatprep.subr.bf16.mxu0 %v935_v0 }
 0x1f6   :  { %892 = vmatpush3.bf16.msra.mxu0 %v891_v60 }
 0x1f7   :  { %893 = vmatprep.subr.bf16.mxu0 %v935_v0 }
 0x1fa   :  { %895 = vmatpush3.bf16.msra.mxu0 %v894_v63 }
 0x1fb   :  { %896 = vmatprep.subr.bf16.mxu0 %v935_v0 }
 0x1fe   :  { %898 = vmatpush3.bf16.msra.mxu0 %v897_v4 }
 0x1ff   :  { %899 = vmatprep.subr.bf16.mxu0 %v935_v0 }
 0x202   :  { %901 = vmatpush3.bf16.msra.mxu0 %v900_v12 }
 0x2b8   :  { %v310_v6 = vpop.f32.mrb[2].mxu0 }
 0x2b9   :  { %v311_v7 = vadd.f32 %v517_v5, %v310_v6  ;;  %v711_v8 = vpop.f32.mrb[3].mxu0 }
 0x2bb   :  { %v314_v9 = vmax.f32 %v311_v7, 0.0 }
 0x2bd   :  { %745 = vmatmul.mubr.f32.vlgmr.msra.gmra.mrb[2].mxu1 %v314_v9 }
 0x390   :  { %v406_v14 = vpop.f32.mrb[2].mxu1 }
 0x391   :  { %v407_v15 = vadd.f32 %v519_v13, %v406_v14  ;;  %v746_v0 = vpop.f32.mrb[3].mxu1 }
 0x393   :  { %v410_v16 = vmax.f32 %v407_v15, 0.0 }
 0x395   :  { %506 = vst [vmem:[%s1047_s3] sm:$0xff] %v410_v16  ;;  %780 = vmatmul.mubr.f32.vlgmr.msra.gmra.mrb[4].mxu0 %v410_v16 }
 0x468   :  { %v502_v18 = vpop.f32.mrb[4].mxu0 }
 0x469   :  { %v503_v19 = vadd.f32 %v521_v17, %v502_v18  ;;  %v781_v20 = vpop.f32.mrb[5].mxu0 }
 0x46b   :  { %507 = vst [vmem:[%s1047_s3 + $0x8] sm:$0xff] %v503_v19 }
 0x46c   :  { %512 = vsyncpa [#allocation3], 1 }

</bundles_post_ra>
